<compile_context>
chip_gen: v5e
topology: v5e:2x2
jax: 0.10.0
libtpu: 0.0.40
codegen_flags: <defaults>
</compile_context>

<pallas_src>
import jax
import jax.numpy as jnp
import numpy as np
from jax.experimental import pallas as pl
from jax.experimental.pallas import tpu as pltpu

LANE = 128


def make_positional_encoding(d_model: int, max_len: int = 2000) -> jnp.ndarray:
    """Deterministic buffer init mirroring the PyTorch __init__ (odd-d_model safe).

    Returns pe pre-flattened to a (1, max_len * d_model) f32 slab so the forward
    wrapper never slices / casts / reshapes it per call.
    """
    position = np.arange(0, max_len, dtype=np.float32)[:, None]            # (max_len, 1)
    div_term = np.exp(np.arange(0, d_model, 2, dtype=np.float32)
                      * (-np.log(10000.0) / d_model))                      # (ceil(d/2),)
    pe = np.zeros((max_len, d_model), dtype=np.float32)
    pe[:, 0::2] = np.sin(position * div_term)
    pe[:, 1::2] = np.cos(position * div_term)[:, : d_model // 2]
    return jnp.asarray(pe.reshape(1, max_len * d_model))                   # (1, max_len*D) f32


def _add_pe_kernel(x_ref, pe_ref, o_ref):
    # x_ref/o_ref: (TB, TN) tile; pe_ref: (1, TN) f32 tile shared by all batch rows.
    # Add in f32 (the PyTorch reference adds an f32 pe buffer), cast back on store.
    o_ref[...] = (x_ref[...].astype(jnp.float32) + pe_ref[...]).astype(o_ref.dtype)


def _round_down(a: int, b: int) -> int:
    return (a // b) * b


def _round_up(a: int, b: int) -> int:
    return ((a + b - 1) // b) * b


def fixed_positional_encoding(x: jnp.ndarray,
                              pe_flat: jnp.ndarray,
                              *,
                              max_block_bytes: int = 2 * 1024 * 1024) -> jnp.ndarray:
    """out = x + pe[:, :S].  x: (B, S, D); pe_flat: (1, max_len*D) f32 buffer."""
    B, S, D = x.shape
    N = S * D
    pe_N = pe_flat.shape[-1]
    assert pe_N >= N, "sequence longer than the positional-encoding buffer"

    x2 = x.reshape(B, N)                          # lane-dense flatten of the (S, D) tail
    itemsize = jnp.dtype(x.dtype).itemsize
    sub = {4: 8, 2: 16, 1: 32}.get(itemsize, 8)   # sublane quantum for x.dtype

    # Batch tile: whole batch if it fits the block budget alongside a full-width
    # feature tile, otherwise the largest multiple of `sub` that fits.
    rows_fit = max(1, max_block_bytes // (N * itemsize))
    if B <= rows_fit:
        TB = B
    else:
        TB = max(sub, _round_down(min(rows_fit, B), sub))

    # Feature tile: whole flattened axis if it fits, else the largest multiple of
    # 128 within the per-block budget (keeps stores lane-dense, unmasked vst).
    cap = max(LANE, _round_down(max_block_bytes // (TB * itemsize), LANE))
    TN = N if N <= cap else cap

    # v7x: if the tensor is worth tiling but the grid collapsed to one block,
    # halve the feature tile (multiple of 128) so both TensorCores get work.
    if B * N * itemsize >= 4 * 1024 * 1024 and TB >= B and TN >= N:
        half = _round_up(pl.cdiv(N, 2), LANE)
        if LANE <= half < N:
            TN = half

    # pe's BlockSpec needs a 128-multiple lane dim unless it spans pe's full axis;
    # if S < max_len and N isn't 128-aligned, shrink TN (small partial trailing
    # tile) instead of slicing/copying pe per call.
    if TN == N and N % LANE != 0 and pe_N != N:
        if N > LANE:
            TN = _round_down(N, LANE)
        else:
            pe_flat = pe_flat[:, :N]              # degenerate tiny-N fallback
            pe_N = N

    # Feature axis outer, batch axis innermost: the pe block index (0, j) is
    # constant across the inner loop, so Pallas skips re-fetching it.
    grid = (pl.cdiv(N, TN), pl.cdiv(B, TB))

    compiler_kwargs = dict(dimension_semantics=("parallel", "parallel"))
    # Double-buffered residency estimate (x + out in x.dtype, pe in f32) + slack.
    est_vmem = 2 * (2 * TB * TN * itemsize + TN * 4) + (1 << 20)
    if est_vmem > 12 * 1024 * 1024:               # only when max_block_bytes was raised
        compiler_kwargs["vmem_limit_bytes"] = min(2 * est_vmem, 64 * 1024 * 1024)

    out2 = pl.pallas_call(
        _add_pe_kernel,
        out_shape=jax.ShapeDtypeStruct((B, N), x.dtype),
        grid_spec=pl.GridSpec(
            grid=grid,
            in_specs=[
                pl.BlockSpec((TB, TN), lambda j, i: (i, j)),   # x tile
                pl.BlockSpec((1, TN), lambda j, i: (0, j)),    # pe tile (batch-shared)
            ],
            out_specs=pl.BlockSpec((TB, TN), lambda j, i: (i, j)),
        ),
        compiler_params=pltpu.CompilerParams(**compiler_kwargs),
    )(x2, pe_flat)

    return out2.reshape(B, S, D)


if __name__ == "__main__":
    # Shapes consistent with MultiModalModel: positional encoding is applied to
    # C = backbone(x).transpose(1, 2) of shape (batch, num_tokens=1917, d_model=16).
    B, S, D = 2, 1917, 16
    MAX_LEN = 1917

    key = jax.random.PRNGKey(0)
    x = jax.random.normal(key, (B, S, D), dtype=jnp.float32)
    pe_flat = make_positional_encoding(D, MAX_LEN)            # (1, 30672) f32, built once

    out = jax.block_until_ready(jax.jit(fixed_positional_encoding)(x, pe_flat))
    ref = x + pe_flat.reshape(MAX_LEN, D)[None, :S, :]
    np.testing.assert_allclose(np.asarray(out), np.asarray(ref), rtol=1e-6, atol=1e-6)

    # Tiled path: multiple feature tiles, partial batch + partial feature tile,
    # pe slab longer than the sequence (tiny deliberate block budget).
    B2, S2, D2 = 9, 100, 24
    x_b = jax.random.normal(jax.random.PRNGKey(1), (B2, S2, D2), dtype=jnp.float32)
    pe_b = make_positional_encoding(D2, 128)
    out_b = jax.block_until_ready(
        fixed_positional_encoding(x_b, pe_b, max_block_bytes=8 * 1024))
    ref_b = x_b + pe_b.reshape(128, D2)[None, :S2, :]
    np.testing.assert_allclose(np.asarray(out_b), np.asarray(ref_b), rtol=1e-6, atol=1e-6)

    # Single-tile path where N isn't 128-aligned and the pe slab is longer than N
    # (exercises the TN shrink instead of a per-call pe slice).
    B3, S3, D3 = 3, 50, 16
    x_c = jax.random.normal(jax.random.PRNGKey(2), (B3, S3, D3), dtype=jnp.float32)
    pe_c = make_positional_encoding(D3, 128)
    out_c = jax.block_until_ready(fixed_positional_encoding(x_c, pe_c))
    ref_c = x_c + pe_c.reshape(128, D3)[None, :S3, :]
    np.testing.assert_allclose(np.asarray(out_c), np.asarray(ref_c), rtol=1e-6, atol=1e-6)

    # bf16 activations: add performed in f32 inside the kernel (matches PyTorch,
    # which adds an f32 pe buffer), output cast back to bf16.
    B4, S4, D4 = 2, 100, 16
    x_d = jax.random.normal(jax.random.PRNGKey(3), (B4, S4, D4), dtype=jnp.bfloat16)
    pe_d = make_positional_encoding(D4, S4)
    out_d = jax.block_until_ready(fixed_positional_encoding(x_d, pe_d))
    ref_d = (x_d.astype(jnp.float32)
             + pe_d.reshape(S4, D4)[None, :S4, :]).astype(jnp.bfloat16)
    np.testing.assert_allclose(np.asarray(out_d, dtype=np.float32),
                               np.asarray(ref_d, dtype=np.float32), rtol=0, atol=0)

    print("KERNEL_OK")
</pallas_src>

<mosaic_0001>
module attributes {stable_mosaic.version = 11 : i64} {
  func.func @_add_pe_kernel(%arg0: i32, %arg1: i32, %arg2: memref<2x30672xf32, #tpu.memory_space<vmem>>, %arg3: memref<1x30672xf32, #tpu.memory_space<vmem>>, %arg4: memref<2x30672xf32, #tpu.memory_space<vmem>>) attributes {dimension_semantics = [#tpu.dimension_semantics<parallel>, #tpu.dimension_semantics<parallel>], iteration_bounds = array<i64: 1, 1>, scalar_prefetch = 0 : i64, scratch_operands = 0 : i64, tpu.core_type = #tpu.core_type<tc>, window_params = [{transform_indices = @transform_0, window_bounds = array<i64: 2, 30672>}, {transform_indices = @transform_1, window_bounds = array<i64: 1, 30672>}, {transform_indices = @transform_2, window_bounds = array<i64: 2, 30672>}]} {
    %c0 = arith.constant 0 : index
    %c0_0 = arith.constant 0 : index
    %0 = vector.load %arg2[%c0, %c0_0] : memref<2x30672xf32, #tpu.memory_space<vmem>>, vector<2x30672xf32>
    %c0_1 = arith.constant 0 : index
    %c0_2 = arith.constant 0 : index
    %1 = vector.load %arg3[%c0_1, %c0_2] : memref<1x30672xf32, #tpu.memory_space<vmem>>, vector<1x30672xf32>
    %2 = vector.broadcast %1 : vector<1x30672xf32> to vector<2x30672xf32>
    %3 = arith.addf %0, %2 : vector<2x30672xf32>
    %c0_3 = arith.constant 0 : index
    %c0_4 = arith.constant 0 : index
    %4 = vector.load %arg4[%c0_3, %c0_4] : memref<2x30672xf32, #tpu.memory_space<vmem>>, vector<2x30672xf32>
    tpu.vector_store %arg4[%c0_3, %c0_4], %3 {strides = array<i32>} : memref<2x30672xf32, #tpu.memory_space<vmem>>, vector<2x30672xf32>,
    return
  }
  func.func @transform_0(%arg0: i32, %arg1: i32) -> (i32, i32) {
    %c0_i32 = arith.constant 0 : i32
    return %arg1, %arg0 : i32, i32
  }
  func.func @transform_1(%arg0: i32, %arg1: i32) -> (i32, i32) {
    %c0_i32 = arith.constant 0 : i32
    %c0_i32_0 = arith.constant 0 : i32
    return %c0_i32, %arg0 : i32, i32
  }
  func.func @transform_2(%arg0: i32, %arg1: i32) -> (i32, i32) {
    %c0_i32 = arith.constant 0 : i32
    return %arg1, %arg0 : i32, i32
  }
}

</mosaic_0001>

<bundles_post_ra>
// kernel: fixed_positional_encoding.1
= control target key start
LH: loop header
LB: loop body
LE: loop exit
PB: predicated region body
PF: predicated region fallthrough
CT: control target
= control target key end

     0   :  { %vm551_vm0 = vcmask 1041408   ;;  %vm553_vm1 = vcmask 1045508   ;;  %vm555_vm2 = vcmask 1043456   ;;  %vm913_vm3 = vcmask 1043458   ;;  %s1570_s1 = inlined_call_operand.vmem [shape: f32[1,30672], index: 1, kind: input, shape index: {}]   ;;  %s1571_s0 = inlined_call_operand.vmem [shape: f32[2,30672], index: 0, kind: input, shape index: {}]   ;;  %s1572_s2 = inlined_call_operand.vmem [shape: f32[2,30672], index: 2, kind: output, shape index: {}]  }
   0x1   :  { %v71_v0 = vld [vmem:[%s1570_s1] sm:$0xff]  ;;  %v72_v5 = vld [vmem:[%s1570_s1 + $0x8] sm:$0xff]  ;;  %v73_v32 = vld [vmem:[%s1570_s1 + $0x10] sm:$0xff]  ;;  %vm916_vm6 = vcmask 654342  }
   0x2   :  { %v131_v1 = vperm.slane %v71_v0, 0  ;;  %v132_v2 = vperm.slane %v71_v0, 1  ;;  %v133_v3 = vperm.slane %v71_v0, 2  ;;  %v134_v4 = vperm.slane %v71_v0, 3  ;;  %v11_v14 = vld [vmem:[%s1571_s0] sm:$0xff]  ;;  %v12_v21 = vld [vmem:[%s1571_s0 + $0x8] sm:$0xff]  ;;  %vm914_vm4 = vmor %vm913_vm3, %vm551_vm0 }
   0x3   :  { %v135_v6 = vperm.slane %v71_v0, 4  ;;  %v136_v7 = vperm.slane %v71_v0, 5  ;;  %v137_v8 = vperm.slane %v71_v0, 6  ;;  %v138_v9 = vperm.slane %v71_v0, 7  ;;  %v13_v34 = vld [vmem:[%s1571_s0 + $0x10] sm:$0xff]  ;;  %v14_v50 = vld [vmem:[%s1571_s0 + $0x18] sm:$0xff]  ;;  %vm915_vm5 = vmor %vm553_vm1, %vm914_vm4 }
   0x4   :  { %v371_v10 = vrot.slane %v132_v2, 6  ;;  %v372_v11 = vrot.slane %v133_v3, 4  ;;  %v373_v12 = vrot.slane %v134_v4, 2  ;;  %v139_v13 = vperm.slane %v72_v5, 0  ;;  %v74_v59 = vld [vmem:[%s1570_s1 + $0x18] sm:$0xff]  ;;  %v15_v61 = vld [vmem:[%s1571_s0 + $0x20] sm:$0xff]  ;;  %vm917_vm7 = vmor %vm916_vm6, %vm915_vm5 }
   0x5   :  { %v374_v15 = vrot.slane %v136_v7, 6  ;;  %v375_v16 = vrot.slane %v137_v8, 4  ;;  %v376_v17 = vrot.slane %v138_v9, 2  ;;  %v140_v18 = vperm.slane %v72_v5, 1 }
   0x6   :  { %v552_v19 = vsel %vm551_vm0, %v131_v1, %v371_v10  ;;  %v554_v20 = vsel %vm553_vm1, %v372_v11, %v373_v12  ;;  %v141_v22 = vperm.slane %v72_v5, 2  ;;  %v142_v23 = vperm.slane %v72_v5, 3  ;;  %v16_v10 = vld [vmem:[%s1571_s0 + $0x28] sm:$0xff] }
   0x7   :  { %v556_v24 = vsel %vm555_vm2, %v552_v19, %v554_v20  ;;  %v557_v25 = vsel %vm551_vm0, %v135_v6, %v374_v15  ;;  %v558_v26 = vsel %vm553_vm1, %v375_v16, %v376_v17  ;;  %v377_v27 = vrot.slane %v140_v18, 6  ;;  %v75_v18 = vld [vmem:[%s1570_s1 + $0x20] sm:$0xff] }
   0x8   :  { %v794_v28 = vadd.f32 %v556_v24, %v11_v14  ;;  %v559_v29 = vsel %vm555_vm2, %v557_v25, %v558_v26  ;;  %v378_v30 = vrot.slane %v141_v22, 4  ;;  %v379_v31 = vrot.slane %v142_v23, 2  ;;  %v17_v24 = vld [vmem:[%s1571_s0 + $0x30] sm:$0xff] }
   0x9   :  { %v795_v33 = vadd.f32 %v559_v29, %v12_v21  ;;  %v560_v35 = vsel %vm551_vm0, %v139_v13, %v377_v27  ;;  %v143_v36 = vperm.slane %v72_v5, 4  ;;  %v144_v37 = vperm.slane %v72_v5, 5 }
   0xa   :  { %854 = vst [vmem:[%s1572_s2] sm:$0xff] %v794_v28  ;;  %v561_v38 = vsel %vm553_vm1, %v378_v30, %v379_v31  ;;  %v145_v39 = vperm.slane %v72_v5, 6  ;;  %v146_v40 = vperm.slane %v72_v5, 7  ;;  %v147_v41 = vperm.slane %v73_v32, 0 }
   0xb   :  { %855 = vst [vmem:[%s1572_s2 + $0x8] sm:$0xff] %v795_v33  ;;  %v562_v42 = vsel %vm555_vm2, %v560_v35, %v561_v38  ;;  %v380_v43 = vrot.slane %v144_v37, 6  ;;  %v148_v44 = vperm.slane %v73_v32, 1  ;;  %v149_v45 = vperm.slane %v73_v32, 2  ;;  %v18_v33 = vld [vmem:[%s1571_s0 + $0x38] sm:$0xff] }
   0xc   :  { %v796_v46 = vadd.f32 %v562_v42, %v13_v34  ;;  %v381_v47 = vrot.slane %v145_v39, 4  ;;  %v382_v48 = vrot.slane %v146_v40, 2  ;;  %v150_v49 = vperm.slane %v73_v32, 3 }
   0xd   :  { %v563_v51 = vsel %vm551_vm0, %v143_v36, %v380_v43  ;;  %v383_v52 = vrot.slane %v148_v44, 6  ;;  %v384_v53 = vrot.slane %v149_v45, 4  ;;  %v151_v54 = vperm.slane %v73_v32, 4 }
   0xe   :  { %856 = vst [vmem:[%s1572_s2 + $0x10] sm:$0xff] %v796_v46  ;;  %v564_v55 = vsel %vm553_vm1, %v381_v47, %v382_v48  ;;  %v385_v56 = vrot.slane %v150_v49, 2  ;;  %v152_v57 = vperm.slane %v73_v32, 5  ;;  %v153_v58 = vperm.slane %v73_v32, 6  ;;  %v19_v47 = vld [vmem:[%s1571_s0 + $0x40] sm:$0xff] }
   0xf   :  { %v565_v60 = vsel %vm555_vm2, %v563_v51, %v564_v55  ;;  %v566_v62 = vsel %vm551_vm0, %v147_v41, %v383_v52  ;;  %v154_v63 = vperm.slane %v73_v32, 7  ;;  %v155_v0 = vperm.slane %v74_v59, 0  ;;  %v76_v41 = vld [vmem:[%s1570_s1 + $0x28] sm:$0xff] }
  0x10   :  { %v797_v1 = vadd.f32 %v565_v60, %v14_v50  ;;  %v567_v2 = vsel %vm553_vm1, %v384_v53, %v385_v56  ;;  %v386_v3 = vrot.slane %v152_v57, 6  ;;  %v387_v4 = vrot.slane %v153_v58, 4  ;;  %v20_v60 = vld [vmem:[%s1571_s0 + $0x48] sm:$0xff] }
  0x11   :  { %v568_v5 = vsel %vm555_vm2, %v566_v62, %v567_v2  ;;  %v388_v6 = vrot.slane %v154_v63, 2  ;;  %v156_v7 = vperm.slane %v74_v59, 1  ;;  %v157_v8 = vperm.slane %v74_v59, 2 }
  0x12   :  { %857 = vst [vmem:[%s1572_s2 + $0x18] sm:$0xff] %v797_v1  ;;  %v798_v9 = vadd.f32 %v568_v5, %v15_v61  ;;  %v569_v11 = vsel %vm551_vm0, %v151_v54, %v386_v3  ;;  %v158_v12 = vperm.slane %v74_v59, 3  ;;  %v159_v13 = vperm.slane %v74_v59, 4 }
  0x13   :  { %v570_v14 = vsel %vm553_vm1, %v387_v4, %v388_v6  ;;  %v389_v15 = vrot.slane %v156_v7, 6  ;;  %v390_v16 = vrot.slane %v157_v8, 4  ;;  %v160_v17 = vperm.slane %v74_v59, 5  ;;  %v77_v4 = vld [vmem:[%s1570_s1 + $0x30] sm:$0xff] }
  0x14   :  { %858 = vst [vmem:[%s1572_s2 + $0x20] sm:$0xff] %v798_v9  ;;  %v571_v19 = vsel %vm555_vm2, %v569_v11, %v570_v14  ;;  %v391_v20 = vrot.slane %v158_v12, 2  ;;  %v161_v21 = vperm.slane %v74_v59, 6  ;;  %v162_v22 = vperm.slane %v74_v59, 7 }
  0x15   :  { %v799_v23 = vadd.f32 %v571_v19, %v16_v10  ;;  %v572_v25 = vsel %vm551_vm0, %v155_v0, %v389_v15  ;;  %v392_v26 = vrot.slane %v160_v17, 6  ;;  %v163_v27 = vperm.slane %v75_v18, 0  ;;  %v21_v10 = vld [vmem:[%s1571_s0 + $0x50] sm:$0xff] }
  0x16   :  { %v573_v28 = vsel %vm553_vm1, %v390_v16, %v391_v20  ;;  %v393_v29 = vrot.slane %v161_v21, 4  ;;  %v394_v30 = vrot.slane %v162_v22, 2  ;;  %v164_v31 = vperm.slane %v75_v18, 1 }
  0x17   :  { %859 = vst [vmem:[%s1572_s2 + $0x28] sm:$0xff] %v799_v23  ;;  %v574_v32 = vsel %vm555_vm2, %v572_v25, %v573_v28  ;;  %v575_v34 = vsel %vm551_vm0, %v159_v13, %v392_v26  ;;  %v165_v35 = vperm.slane %v75_v18, 2  ;;  %v166_v36 = vperm.slane %v75_v18, 3  ;;  %v22_v23 = vld [vmem:[%s1571_s0 + $0x58] sm:$0xff] }
  0x18   :  { %v800_v37 = vadd.f32 %v574_v32, %v17_v24  ;;  %v576_v38 = vsel %vm553_vm1, %v393_v29, %v394_v30  ;;  %v395_v39 = vrot.slane %v164_v31, 6  ;;  %v167_v40 = vperm.slane %v75_v18, 4  ;;  %v78_v31 = vld [vmem:[%s1570_s1 + $0x38] sm:$0xff] }
  0x19   :  { %v577_v42 = vsel %vm555_vm2, %v575_v34, %v576_v38  ;;  %v396_v43 = vrot.slane %v165_v35, 4  ;;  %v397_v44 = vrot.slane %v166_v36, 2  ;;  %v168_v45 = vperm.slane %v75_v18, 5 }
  0x1a   :  { %860 = vst [vmem:[%s1572_s2 + $0x30] sm:$0xff] %v800_v37  ;;  %v801_v46 = vadd.f32 %v577_v42, %v18_v33  ;;  %v578_v48 = vsel %vm551_vm0, %v163_v27, %v395_v39  ;;  %v169_v49 = vperm.slane %v75_v18, 6  ;;  %v170_v50 = vperm.slane %v75_v18, 7  ;;  %v23_v33 = vld [vmem:[%s1571_s0 + $0x60] sm:$0xff] }
  0x1b   :  { %v579_v51 = vsel %vm553_vm1, %v396_v43, %v397_v44  ;;  %v398_v52 = vrot.slane %v168_v45, 6  ;;  %v171_v53 = vperm.slane %v76_v41, 0  ;;  %v172_v54 = vperm.slane %v76_v41, 1 }
  0x1c   :  { %861 = vst [vmem:[%s1572_s2 + $0x38] sm:$0xff] %v801_v46  ;;  %v580_v55 = vsel %vm555_vm2, %v578_v48, %v579_v51  ;;  %v399_v56 = vrot.slane %v169_v49, 4  ;;  %v400_v57 = vrot.slane %v170_v50, 2  ;;  %v173_v58 = vperm.slane %v76_v41, 2  ;;  %v24_v46 = vld [vmem:[%s1571_s0 + $0x68] sm:$0xff] }
  0x1d   :  { %v802_v59 = vadd.f32 %v580_v55, %v19_v47  ;;  %v581_v61 = vsel %vm551_vm0, %v167_v40, %v398_v52  ;;  %v174_v62 = vperm.slane %v76_v41, 3  ;;  %v401_v63 = vrot.slane %v172_v54, 6  ;;  %v79_v54 = vld [vmem:[%s1570_s1 + $0x40] sm:$0xff] }
  0x1e   :  { %v582_v0 = vsel %vm553_vm1, %v399_v56, %v400_v57  ;;  %v402_v1 = vrot.slane %v173_v58, 4  ;;  %v175_v2 = vperm.slane %v76_v41, 4  ;;  %v176_v3 = vperm.slane %v76_v41, 5 }
  0x1f   :  { %862 = vst [vmem:[%s1572_s2 + $0x40] sm:$0xff] %v802_v59  ;;  %v583_v5 = vsel %vm555_vm2, %v581_v61, %v582_v0  ;;  %v403_v6 = vrot.slane %v174_v62, 2  ;;  %v584_v7 = vsel %vm551_vm0, %v171_v53, %v401_v63  ;;  %v177_v8 = vperm.slane %v76_v41, 6 }
  0x20   :  { %v803_v9 = vadd.f32 %v583_v5, %v20_v60  ;;  %v178_v11 = vperm.slane %v76_v41, 7  ;;  %v404_v12 = vrot.slane %v176_v3, 6  ;;  %v179_v13 = vperm.slane %v77_v4, 0  ;;  %v25_v60 = vld [vmem:[%s1571_s0 + $0x70] sm:$0xff]  ;;  %v26_v5 = vld [vmem:[%s1571_s0 + $0x78] sm:$0xff] }
  0x21   :  { %v585_v14 = vsel %vm553_vm1, %v402_v1, %v403_v6  ;;  %v405_v15 = vrot.slane %v177_v8, 4  ;;  %v180_v16 = vperm.slane %v77_v4, 1  ;;  %v181_v17 = vperm.slane %v77_v4, 2 }
  0x22   :  { %863 = vst [vmem:[%s1572_s2 + $0x48] sm:$0xff] %v803_v9  ;;  %v586_v18 = vsel %vm555_vm2, %v584_v7, %v585_v14  ;;  %v406_v19 = vrot.slane %v178_v11, 2  ;;  %v587_v20 = vsel %vm551_vm0, %v175_v2, %v404_v12  ;;  %v182_v21 = vperm.slane %v77_v4, 3 }
  0x23   :  { %v804_v22 = vadd.f32 %v586_v18, %v21_v10  ;;  %v407_v24 = vrot.slane %v180_v16, 6  ;;  %v408_v25 = vrot.slane %v181_v17, 4  ;;  %v183_v26 = vperm.slane %v77_v4, 4 }
  0x24   :  { %v588_v27 = vsel %vm553_vm1, %v405_v15, %v406_v19  ;;  %v409_v28 = vrot.slane %v182_v21, 2  ;;  %v184_v29 = vperm.slane %v77_v4, 5  ;;  %v185_v30 = vperm.slane %v77_v4, 6  ;;  %v27_v19 = vld [vmem:[%s1571_s0 + $0x80] sm:$0xff] }
  0x25   :  { %864 = vst [vmem:[%s1572_s2 + $0x50] sm:$0xff] %v804_v22  ;;  %v589_v32 = vsel %vm555_vm2, %v587_v20, %v588_v27  ;;  %v590_v34 = vsel %vm551_vm0, %v179_v13, %v407_v24  ;;  %v186_v35 = vperm.slane %v77_v4, 7  ;;  %v187_v36 = vperm.slane %v78_v31, 0  ;;  %v80_v13 = vld [vmem:[%s1570_s1 + $0x48] sm:$0xff] }
  0x26   :  { %v805_v37 = vadd.f32 %v589_v32, %v22_v23  ;;  %v591_v38 = vsel %vm553_vm1, %v408_v25, %v409_v28  ;;  %v410_v39 = vrot.slane %v184_v29, 6  ;;  %v411_v40 = vrot.slane %v185_v30, 4  ;;  %v28_v32 = vld [vmem:[%s1571_s0 + $0x88] sm:$0xff] }
  0x27   :  { %v592_v41 = vsel %vm555_vm2, %v590_v34, %v591_v38  ;;  %v412_v42 = vrot.slane %v186_v35, 2  ;;  %v188_v43 = vperm.slane %v78_v31, 1  ;;  %v189_v44 = vperm.slane %v78_v31, 2 }
  0x28   :  { %865 = vst [vmem:[%s1572_s2 + $0x58] sm:$0xff] %v805_v37  ;;  %v806_v45 = vadd.f32 %v592_v41, %v23_v33  ;;  %v593_v47 = vsel %vm551_vm0, %v183_v26, %v410_v39  ;;  %v190_v48 = vperm.slane %v78_v31, 3  ;;  %v191_v49 = vperm.slane %v78_v31, 4 }
  0x29   :  { %v594_v50 = vsel %vm553_vm1, %v411_v40, %v412_v42  ;;  %v413_v51 = vrot.slane %v188_v43, 6  ;;  %v414_v52 = vrot.slane %v189_v44, 4  ;;  %v192_v53 = vperm.slane %v78_v31, 5  ;;  %v81_v40 = vld [vmem:[%s1570_s1 + $0x50] sm:$0xff] }
  0x2a   :  { %866 = vst [vmem:[%s1572_s2 + $0x60] sm:$0xff] %v806_v45  ;;  %v595_v55 = vsel %vm555_vm2, %v593_v47, %v594_v50  ;;  %v415_v56 = vrot.slane %v190_v48, 2  ;;  %v193_v57 = vperm.slane %v78_v31, 6  ;;  %v194_v58 = vperm.slane %v78_v31, 7 }
  0x2b   :  { %v807_v59 = vadd.f32 %v595_v55, %v24_v46  ;;  %v596_v61 = vsel %vm551_vm0, %v187_v36, %v413_v51  ;;  %v416_v62 = vrot.slane %v192_v53, 6  ;;  %v195_v63 = vperm.slane %v79_v54, 0  ;;  %v29_v46 = vld [vmem:[%s1571_s0 + $0x90] sm:$0xff] }
  0x2c   :  { %v597_v0 = vsel %vm553_vm1, %v414_v52, %v415_v56  ;;  %v417_v1 = vrot.slane %v193_v57, 4  ;;  %v418_v2 = vrot.slane %v194_v58, 2  ;;  %v196_v3 = vperm.slane %v79_v54, 1 }
  0x2d   :  { %867 = vst [vmem:[%s1572_s2 + $0x68] sm:$0xff] %v807_v59  ;;  %v598_v4 = vsel %vm555_vm2, %v596_v61, %v597_v0  ;;  %v599_v6 = vsel %vm551_vm0, %v191_v49, %v416_v62  ;;  %v197_v7 = vperm.slane %v79_v54, 2  ;;  %v198_v8 = vperm.slane %v79_v54, 3  ;;  %v30_v59 = vld [vmem:[%s1571_s0 + $0x98] sm:$0xff] }
  0x2e   :  { %v808_v9 = vadd.f32 %v598_v4, %v25_v60  ;;  %v600_v10 = vsel %vm553_vm1, %v417_v1, %v418_v2  ;;  %v419_v11 = vrot.slane %v196_v3, 6  ;;  %v199_v12 = vperm.slane %v79_v54, 4  ;;  %v82_v3 = vld [vmem:[%s1570_s1 + $0x58] sm:$0xff] }
  0x2f   :  { %v601_v14 = vsel %vm555_vm2, %v599_v6, %v600_v10  ;;  %v420_v15 = vrot.slane %v197_v7, 4  ;;  %v421_v16 = vrot.slane %v198_v8, 2  ;;  %v200_v17 = vperm.slane %v79_v54, 5 }
  0x30   :  { %868 = vst [vmem:[%s1572_s2 + $0x70] sm:$0xff] %v808_v9  ;;  %v809_v18 = vadd.f32 %v601_v14, %v26_v5  ;;  %v602_v20 = vsel %vm551_vm0, %v195_v63, %v419_v11  ;;  %v201_v21 = vperm.slane %v79_v54, 6  ;;  %v202_v22 = vperm.slane %v79_v54, 7  ;;  %v31_v5 = vld [vmem:[%s1571_s0 + $0xa0] sm:$0xff] }
  0x31   :  { %v603_v23 = vsel %vm553_vm1, %v420_v15, %v421_v16  ;;  %v422_v24 = vrot.slane %v200_v17, 6  ;;  %v203_v25 = vperm.slane %v80_v13, 0  ;;  %v204_v26 = vperm.slane %v80_v13, 1 }
  0x32   :  { %869 = vst [vmem:[%s1572_s2 + $0x78] sm:$0xff] %v809_v18  ;;  %v604_v27 = vsel %vm555_vm2, %v602_v20, %v603_v23  ;;  %v423_v28 = vrot.slane %v201_v21, 4  ;;  %v424_v29 = vrot.slane %v202_v22, 2  ;;  %v205_v30 = vperm.slane %v80_v13, 2  ;;  %v32_v18 = vld [vmem:[%s1571_s0 + $0xa8] sm:$0xff] }
  0x33   :  { %v810_v31 = vadd.f32 %v604_v27, %v27_v19  ;;  %v605_v33 = vsel %vm551_vm0, %v199_v12, %v422_v24  ;;  %v206_v34 = vperm.slane %v80_v13, 3  ;;  %v425_v35 = vrot.slane %v204_v26, 6  ;;  %v83_v26 = vld [vmem:[%s1570_s1 + $0x60] sm:$0xff] }
  0x34   :  { %v606_v36 = vsel %vm553_vm1, %v423_v28, %v424_v29  ;;  %v426_v37 = vrot.slane %v205_v30, 4  ;;  %v207_v38 = vperm.slane %v80_v13, 4  ;;  %v208_v39 = vperm.slane %v80_v13, 5 }
  0x35   :  { %870 = vst [vmem:[%s1572_s2 + $0x80] sm:$0xff] %v810_v31  ;;  %v607_v41 = vsel %vm555_vm2, %v605_v33, %v606_v36  ;;  %v427_v42 = vrot.slane %v206_v34, 2  ;;  %v608_v43 = vsel %vm551_vm0, %v203_v25, %v425_v35  ;;  %v209_v44 = vperm.slane %v80_v13, 6 }
  0x36   :  { %v811_v45 = vadd.f32 %v607_v41, %v28_v32  ;;  %v210_v47 = vperm.slane %v80_v13, 7  ;;  %v428_v48 = vrot.slane %v208_v39, 6  ;;  %v211_v49 = vperm.slane %v81_v40, 0  ;;  %v33_v32 = vld [vmem:[%s1571_s0 + $0xb0] sm:$0xff]  ;;  %v34_v41 = vld [vmem:[%s1571_s0 + $0xb8] sm:$0xff] }
  0x37   :  { %v609_v50 = vsel %vm553_vm1, %v426_v37, %v427_v42  ;;  %v429_v51 = vrot.slane %v209_v44, 4  ;;  %v212_v52 = vperm.slane %v81_v40, 1  ;;  %v213_v53 = vperm.slane %v81_v40, 2 }
  0x38   :  { %871 = vst [vmem:[%s1572_s2 + $0x88] sm:$0xff] %v811_v45  ;;  %v610_v54 = vsel %vm555_vm2, %v608_v43, %v609_v50  ;;  %v430_v55 = vrot.slane %v210_v47, 2  ;;  %v611_v56 = vsel %vm551_vm0, %v207_v38, %v428_v48  ;;  %v214_v57 = vperm.slane %v81_v40, 3 }
  0x39   :  { %v812_v58 = vadd.f32 %v610_v54, %v29_v46  ;;  %v431_v60 = vrot.slane %v212_v52, 6  ;;  %v432_v61 = vrot.slane %v213_v53, 4  ;;  %v215_v62 = vperm.slane %v81_v40, 4 }
  0x3a   :  { %v612_v63 = vsel %vm553_vm1, %v429_v51, %v430_v55  ;;  %v433_v0 = vrot.slane %v214_v57, 2  ;;  %v216_v1 = vperm.slane %v81_v40, 5  ;;  %v217_v2 = vperm.slane %v81_v40, 6  ;;  %v35_v55 = vld [vmem:[%s1571_s0 + $0xc0] sm:$0xff] }
  0x3b   :  { %872 = vst [vmem:[%s1572_s2 + $0x90] sm:$0xff] %v812_v58  ;;  %v613_v4 = vsel %vm555_vm2, %v611_v56, %v612_v63  ;;  %v614_v6 = vsel %vm551_vm0, %v211_v49, %v431_v60  ;;  %v218_v7 = vperm.slane %v81_v40, 7  ;;  %v219_v8 = vperm.slane %v82_v3, 0  ;;  %v84_v49 = vld [vmem:[%s1570_s1 + $0x68] sm:$0xff] }
  0x3c   :  { %v813_v9 = vadd.f32 %v613_v4, %v30_v59  ;;  %v615_v10 = vsel %vm553_vm1, %v432_v61, %v433_v0  ;;  %v434_v11 = vrot.slane %v216_v1, 6  ;;  %v435_v12 = vrot.slane %v217_v2, 4  ;;  %v36_v4 = vld [vmem:[%s1571_s0 + $0xc8] sm:$0xff] }
  0x3d   :  { %v616_v13 = vsel %vm555_vm2, %v614_v6, %v615_v10  ;;  %v436_v14 = vrot.slane %v218_v7, 2  ;;  %v220_v15 = vperm.slane %v82_v3, 1  ;;  %v221_v16 = vperm.slane %v82_v3, 2 }
  0x3e   :  { %873 = vst [vmem:[%s1572_s2 + $0x98] sm:$0xff] %v813_v9  ;;  %v814_v17 = vadd.f32 %v616_v13, %v31_v5  ;;  %v617_v19 = vsel %vm551_vm0, %v215_v62, %v434_v11  ;;  %v222_v20 = vperm.slane %v82_v3, 3  ;;  %v223_v21 = vperm.slane %v82_v3, 4 }
  0x3f   :  { %v618_v22 = vsel %vm553_vm1, %v435_v12, %v436_v14  ;;  %v437_v23 = vrot.slane %v220_v15, 6  ;;  %v438_v24 = vrot.slane %v221_v16, 4  ;;  %v224_v25 = vperm.slane %v82_v3, 5  ;;  %v85_v12 = vld [vmem:[%s1570_s1 + $0x70] sm:$0xff] }
  0x40   :  { %874 = vst [vmem:[%s1572_s2 + $0xa0] sm:$0xff] %v814_v17  ;;  %v619_v27 = vsel %vm555_vm2, %v617_v19, %v618_v22  ;;  %v439_v28 = vrot.slane %v222_v20, 2  ;;  %v225_v29 = vperm.slane %v82_v3, 6  ;;  %v226_v30 = vperm.slane %v82_v3, 7 }
  0x41   :  { %v815_v31 = vadd.f32 %v619_v27, %v32_v18  ;;  %v620_v33 = vsel %vm551_vm0, %v219_v8, %v437_v23  ;;  %v440_v34 = vrot.slane %v224_v25, 6  ;;  %v227_v35 = vperm.slane %v83_v26, 0  ;;  %v37_v18 = vld [vmem:[%s1571_s0 + $0xd0] sm:$0xff] }
  0x42   :  { %v621_v36 = vsel %vm553_vm1, %v438_v24, %v439_v28  ;;  %v441_v37 = vrot.slane %v225_v29, 4  ;;  %v442_v38 = vrot.slane %v226_v30, 2  ;;  %v228_v39 = vperm.slane %v83_v26, 1 }
  0x43   :  { %875 = vst [vmem:[%s1572_s2 + $0xa8] sm:$0xff] %v815_v31  ;;  %v622_v40 = vsel %vm555_vm2, %v620_v33, %v621_v36  ;;  %v623_v42 = vsel %vm551_vm0, %v223_v21, %v440_v34  ;;  %v229_v43 = vperm.slane %v83_v26, 2  ;;  %v230_v44 = vperm.slane %v83_v26, 3  ;;  %v38_v31 = vld [vmem:[%s1571_s0 + $0xd8] sm:$0xff] }
  0x44   :  { %v816_v45 = vadd.f32 %v622_v40, %v33_v32  ;;  %v624_v46 = vsel %vm553_vm1, %v441_v37, %v442_v38  ;;  %v443_v47 = vrot.slane %v228_v39, 6  ;;  %v231_v48 = vperm.slane %v83_v26, 4  ;;  %v86_v39 = vld [vmem:[%s1570_s1 + $0x78] sm:$0xff] }
  0x45   :  { %v625_v50 = vsel %vm555_vm2, %v623_v42, %v624_v46  ;;  %v444_v51 = vrot.slane %v229_v43, 4  ;;  %v445_v52 = vrot.slane %v230_v44, 2  ;;  %v232_v53 = vperm.slane %v83_v26, 5 }
  0x46   :  { %876 = vst [vmem:[%s1572_s2 + $0xb0] sm:$0xff] %v816_v45  ;;  %v817_v54 = vadd.f32 %v625_v50, %v34_v41  ;;  %v626_v56 = vsel %vm551_vm0, %v227_v35, %v443_v47  ;;  %v233_v57 = vperm.slane %v83_v26, 6  ;;  %v234_v58 = vperm.slane %v83_v26, 7  ;;  %v39_v41 = vld [vmem:[%s1571_s0 + $0xe0] sm:$0xff] }
  0x47   :  { %v627_v59 = vsel %vm553_vm1, %v444_v51, %v445_v52  ;;  %v446_v60 = vrot.slane %v232_v53, 6  ;;  %v235_v61 = vperm.slane %v84_v49, 0  ;;  %v236_v62 = vperm.slane %v84_v49, 1 }
  0x48   :  { %877 = vst [vmem:[%s1572_s2 + $0xb8] sm:$0xff] %v817_v54  ;;  %v628_v63 = vsel %vm555_vm2, %v626_v56, %v627_v59  ;;  %v447_v0 = vrot.slane %v233_v57, 4  ;;  %v448_v1 = vrot.slane %v234_v58, 2  ;;  %v237_v2 = vperm.slane %v84_v49, 2  ;;  %v40_v54 = vld [vmem:[%s1571_s0 + $0xe8] sm:$0xff] }
  0x49   :  { %v818_v3 = vadd.f32 %v628_v63, %v35_v55  ;;  %v629_v5 = vsel %vm551_vm0, %v231_v48, %v446_v60  ;;  %v238_v6 = vperm.slane %v84_v49, 3  ;;  %v449_v7 = vrot.slane %v236_v62, 6  ;;  %v87_v62 = vld [vmem:[%s1570_s1 + $0x80] sm:$0xff] }
  0x4a   :  { %v630_v8 = vsel %vm553_vm1, %v447_v0, %v448_v1  ;;  %v450_v9 = vrot.slane %v237_v2, 4  ;;  %v239_v10 = vperm.slane %v84_v49, 4  ;;  %v240_v11 = vperm.slane %v84_v49, 5 }
  0x4b   :  { %878 = vst [vmem:[%s1572_s2 + $0xc0] sm:$0xff] %v818_v3  ;;  %v631_v13 = vsel %vm555_vm2, %v629_v5, %v630_v8  ;;  %v451_v14 = vrot.slane %v238_v6, 2  ;;  %v632_v15 = vsel %vm551_vm0, %v235_v61, %v449_v7  ;;  %v241_v16 = vperm.slane %v84_v49, 6 }
  0x4c   :  { %v819_v17 = vadd.f32 %v631_v13, %v36_v4  ;;  %v242_v19 = vperm.slane %v84_v49, 7  ;;  %v452_v20 = vrot.slane %v240_v11, 6  ;;  %v243_v21 = vperm.slane %v85_v12, 0  ;;  %v41_v4 = vld [vmem:[%s1571_s0 + $0xf0] sm:$0xff]  ;;  %v42_v13 = vld [vmem:[%s1571_s0 + $0xf8] sm:$0xff] }
  0x4d   :  { %v633_v22 = vsel %vm553_vm1, %v450_v9, %v451_v14  ;;  %v453_v23 = vrot.slane %v241_v16, 4  ;;  %v244_v24 = vperm.slane %v85_v12, 1  ;;  %v245_v25 = vperm.slane %v85_v12, 2 }
  0x4e   :  { %879 = vst [vmem:[%s1572_s2 + $0xc8] sm:$0xff] %v819_v17  ;;  %v634_v26 = vsel %vm555_vm2, %v632_v15, %v633_v22  ;;  %v454_v27 = vrot.slane %v242_v19, 2  ;;  %v635_v28 = vsel %vm551_vm0, %v239_v10, %v452_v20  ;;  %v246_v29 = vperm.slane %v85_v12, 3 }
  0x4f   :  { %v820_v30 = vadd.f32 %v634_v26, %v37_v18  ;;  %v455_v32 = vrot.slane %v244_v24, 6  ;;  %v456_v33 = vrot.slane %v245_v25, 4  ;;  %v247_v34 = vperm.slane %v85_v12, 4 }
  0x50   :  { %v636_v35 = vsel %vm553_vm1, %v453_v23, %v454_v27  ;;  %v457_v36 = vrot.slane %v246_v29, 2  ;;  %v248_v37 = vperm.slane %v85_v12, 5  ;;  %v249_v38 = vperm.slane %v85_v12, 6  ;;  %v43_v27 = vld [vmem:[%s1571_s0 + $0x100] sm:$0xff] }
  0x51   :  { %880 = vst [vmem:[%s1572_s2 + $0xd0] sm:$0xff] %v820_v30  ;;  %v637_v40 = vsel %vm555_vm2, %v635_v28, %v636_v35  ;;  %v638_v42 = vsel %vm551_vm0, %v243_v21, %v455_v32  ;;  %v250_v43 = vperm.slane %v85_v12, 7  ;;  %v251_v44 = vperm.slane %v86_v39, 0  ;;  %v88_v21 = vld [vmem:[%s1570_s1 + $0x88] sm:$0xff] }
  0x52   :  { %v821_v45 = vadd.f32 %v637_v40, %v38_v31  ;;  %v639_v46 = vsel %vm553_vm1, %v456_v33, %v457_v36  ;;  %v458_v47 = vrot.slane %v248_v37, 6  ;;  %v459_v48 = vrot.slane %v249_v38, 4  ;;  %v44_v40 = vld [vmem:[%s1571_s0 + $0x108] sm:$0xff] }
  0x53   :  { %v640_v49 = vsel %vm555_vm2, %v638_v42, %v639_v46  ;;  %v460_v50 = vrot.slane %v250_v43, 2  ;;  %v252_v51 = vperm.slane %v86_v39, 1  ;;  %v253_v52 = vperm.slane %v86_v39, 2 }
  0x54   :  { %881 = vst [vmem:[%s1572_s2 + $0xd8] sm:$0xff] %v821_v45  ;;  %v822_v53 = vadd.f32 %v640_v49, %v39_v41  ;;  %v641_v55 = vsel %vm551_vm0, %v247_v34, %v458_v47  ;;  %v254_v56 = vperm.slane %v86_v39, 3  ;;  %v255_v57 = vperm.slane %v86_v39, 4 }
  0x55   :  { %v642_v58 = vsel %vm553_vm1, %v459_v48, %v460_v50  ;;  %v461_v59 = vrot.slane %v252_v51, 6  ;;  %v462_v60 = vrot.slane %v253_v52, 4  ;;  %v256_v61 = vperm.slane %v86_v39, 5  ;;  %v89_v48 = vld [vmem:[%s1570_s1 + $0x90] sm:$0xff] }
  0x56   :  { %882 = vst [vmem:[%s1572_s2 + $0xe0] sm:$0xff] %v822_v53  ;;  %v643_v63 = vsel %vm555_vm2, %v641_v55, %v642_v58  ;;  %v463_v0 = vrot.slane %v254_v56, 2  ;;  %v257_v1 = vperm.slane %v86_v39, 6  ;;  %v258_v2 = vperm.slane %v86_v39, 7 }
  0x57   :  { %v823_v3 = vadd.f32 %v643_v63, %v40_v54  ;;  %v644_v5 = vsel %vm551_vm0, %v251_v44, %v461_v59  ;;  %v464_v6 = vrot.slane %v256_v61, 6  ;;  %v259_v7 = vperm.slane %v87_v62, 0  ;;  %v45_v54 = vld [vmem:[%s1571_s0 + $0x110] sm:$0xff] }
  0x58   :  { %v645_v8 = vsel %vm553_vm1, %v462_v60, %v463_v0  ;;  %v465_v9 = vrot.slane %v257_v1, 4  ;;  %v466_v10 = vrot.slane %v258_v2, 2  ;;  %v260_v11 = vperm.slane %v87_v62, 1 }
  0x59   :  { %883 = vst [vmem:[%s1572_s2 + $0xe8] sm:$0xff] %v823_v3  ;;  %v646_v12 = vsel %vm555_vm2, %v644_v5, %v645_v8  ;;  %v647_v14 = vsel %vm551_vm0, %v255_v57, %v464_v6  ;;  %v261_v15 = vperm.slane %v87_v62, 2  ;;  %v262_v16 = vperm.slane %v87_v62, 3  ;;  %v46_v3 = vld [vmem:[%s1571_s0 + $0x118] sm:$0xff] }
  0x5a   :  { %v824_v17 = vadd.f32 %v646_v12, %v41_v4  ;;  %v648_v18 = vsel %vm553_vm1, %v465_v9, %v466_v10  ;;  %v467_v19 = vrot.slane %v260_v11, 6  ;;  %v263_v20 = vperm.slane %v87_v62, 4  ;;  %v90_v11 = vld [vmem:[%s1570_s1 + $0x98] sm:$0xff] }
  0x5b   :  { %v649_v22 = vsel %vm555_vm2, %v647_v14, %v648_v18  ;;  %v468_v23 = vrot.slane %v261_v15, 4  ;;  %v469_v24 = vrot.slane %v262_v16, 2  ;;  %v264_v25 = vperm.slane %v87_v62, 5 }
  0x5c   :  { %884 = vst [vmem:[%s1572_s2 + $0xf0] sm:$0xff] %v824_v17  ;;  %v825_v26 = vadd.f32 %v649_v22, %v42_v13  ;;  %v650_v28 = vsel %vm551_vm0, %v259_v7, %v467_v19  ;;  %v265_v29 = vperm.slane %v87_v62, 6  ;;  %v266_v30 = vperm.slane %v87_v62, 7  ;;  %v47_v13 = vld [vmem:[%s1571_s0 + $0x120] sm:$0xff] }
  0x5d   :  { %v651_v31 = vsel %vm553_vm1, %v468_v23, %v469_v24  ;;  %v470_v32 = vrot.slane %v264_v25, 6  ;;  %v267_v33 = vperm.slane %v88_v21, 0  ;;  %v268_v34 = vperm.slane %v88_v21, 1 }
  0x5e   :  { %885 = vst [vmem:[%s1572_s2 + $0xf8] sm:$0xff] %v825_v26  ;;  %v652_v35 = vsel %vm555_vm2, %v650_v28, %v651_v31  ;;  %v471_v36 = vrot.slane %v265_v29, 4  ;;  %v472_v37 = vrot.slane %v266_v30, 2  ;;  %v269_v38 = vperm.slane %v88_v21, 2  ;;  %v48_v26 = vld [vmem:[%s1571_s0 + $0x128] sm:$0xff] }
  0x5f   :  { %v826_v39 = vadd.f32 %v652_v35, %v43_v27  ;;  %v653_v41 = vsel %vm551_vm0, %v263_v20, %v470_v32  ;;  %v270_v42 = vperm.slane %v88_v21, 3  ;;  %v473_v43 = vrot.slane %v268_v34, 6  ;;  %v91_v34 = vld [vmem:[%s1570_s1 + $0xa0] sm:$0xff] }
  0x60   :  { %v654_v44 = vsel %vm553_vm1, %v471_v36, %v472_v37  ;;  %v474_v45 = vrot.slane %v269_v38, 4  ;;  %v271_v46 = vperm.slane %v88_v21, 4  ;;  %v272_v47 = vperm.slane %v88_v21, 5 }
  0x61   :  { %886 = vst [vmem:[%s1572_s2 + $0x100] sm:$0xff] %v826_v39  ;;  %v655_v49 = vsel %vm555_vm2, %v653_v41, %v654_v44  ;;  %v475_v50 = vrot.slane %v270_v42, 2  ;;  %v656_v51 = vsel %vm551_vm0, %v267_v33, %v473_v43  ;;  %v273_v52 = vperm.slane %v88_v21, 6 }
  0x62   :  { %v827_v53 = vadd.f32 %v655_v49, %v44_v40  ;;  %v274_v55 = vperm.slane %v88_v21, 7  ;;  %v476_v56 = vrot.slane %v272_v47, 6  ;;  %v275_v57 = vperm.slane %v89_v48, 0  ;;  %v49_v40 = vld [vmem:[%s1571_s0 + $0x130] sm:$0xff]  ;;  %v50_v49 = vld [vmem:[%s1571_s0 + $0x138] sm:$0xff] }
  0x63   :  { %v657_v58 = vsel %vm553_vm1, %v474_v45, %v475_v50  ;;  %v477_v59 = vrot.slane %v273_v52, 4  ;;  %v276_v60 = vperm.slane %v89_v48, 1  ;;  %v277_v61 = vperm.slane %v89_v48, 2 }
  0x64   :  { %887 = vst [vmem:[%s1572_s2 + $0x108] sm:$0xff] %v827_v53  ;;  %v658_v62 = vsel %vm555_vm2, %v656_v51, %v657_v58  ;;  %v478_v63 = vrot.slane %v274_v55, 2  ;;  %v659_v0 = vsel %vm551_vm0, %v271_v46, %v476_v56  ;;  %v278_v1 = vperm.slane %v89_v48, 3 }
  0x65   :  { %v828_v2 = vadd.f32 %v658_v62, %v45_v54  ;;  %v479_v4 = vrot.slane %v276_v60, 6  ;;  %v480_v5 = vrot.slane %v277_v61, 4  ;;  %v279_v6 = vperm.slane %v89_v48, 4 }
  0x66   :  { %v660_v7 = vsel %vm553_vm1, %v477_v59, %v478_v63  ;;  %v481_v8 = vrot.slane %v278_v1, 2  ;;  %v280_v9 = vperm.slane %v89_v48, 5  ;;  %v281_v10 = vperm.slane %v89_v48, 6  ;;  %v51_v63 = vld [vmem:[%s1571_s0 + $0x140] sm:$0xff] }
  0x67   :  { %888 = vst [vmem:[%s1572_s2 + $0x110] sm:$0xff] %v828_v2  ;;  %v661_v12 = vsel %vm555_vm2, %v659_v0, %v660_v7  ;;  %v662_v14 = vsel %vm551_vm0, %v275_v57, %v479_v4  ;;  %v282_v15 = vperm.slane %v89_v48, 7  ;;  %v283_v16 = vperm.slane %v90_v11, 0  ;;  %v92_v57 = vld [vmem:[%s1570_s1 + $0xa8] sm:$0xff] }
  0x68   :  { %v829_v17 = vadd.f32 %v661_v12, %v46_v3  ;;  %v663_v18 = vsel %vm553_vm1, %v480_v5, %v481_v8  ;;  %v482_v19 = vrot.slane %v280_v9, 6  ;;  %v483_v20 = vrot.slane %v281_v10, 4  ;;  %v52_v12 = vld [vmem:[%s1571_s0 + $0x148] sm:$0xff] }
  0x69   :  { %v664_v21 = vsel %vm555_vm2, %v662_v14, %v663_v18  ;;  %v484_v22 = vrot.slane %v282_v15, 2  ;;  %v284_v23 = vperm.slane %v90_v11, 1  ;;  %v285_v24 = vperm.slane %v90_v11, 2 }
  0x6a   :  { %889 = vst [vmem:[%s1572_s2 + $0x118] sm:$0xff] %v829_v17  ;;  %v830_v25 = vadd.f32 %v664_v21, %v47_v13  ;;  %v665_v27 = vsel %vm551_vm0, %v279_v6, %v482_v19  ;;  %v286_v28 = vperm.slane %v90_v11, 3  ;;  %v287_v29 = vperm.slane %v90_v11, 4 }
  0x6b   :  { %v666_v30 = vsel %vm553_vm1, %v483_v20, %v484_v22  ;;  %v485_v31 = vrot.slane %v284_v23, 6  ;;  %v486_v32 = vrot.slane %v285_v24, 4  ;;  %v288_v33 = vperm.slane %v90_v11, 5  ;;  %v93_v20 = vld [vmem:[%s1570_s1 + $0xb0] sm:$0xff] }
  0x6c   :  { %890 = vst [vmem:[%s1572_s2 + $0x120] sm:$0xff] %v830_v25  ;;  %v667_v35 = vsel %vm555_vm2, %v665_v27, %v666_v30  ;;  %v487_v36 = vrot.slane %v286_v28, 2  ;;  %v289_v37 = vperm.slane %v90_v11, 6  ;;  %v290_v38 = vperm.slane %v90_v11, 7 }
  0x6d   :  { %v831_v39 = vadd.f32 %v667_v35, %v48_v26  ;;  %v668_v41 = vsel %vm551_vm0, %v283_v16, %v485_v31  ;;  %v488_v42 = vrot.slane %v288_v33, 6  ;;  %v291_v43 = vperm.slane %v91_v34, 0  ;;  %v53_v26 = vld [vmem:[%s1571_s0 + $0x150] sm:$0xff] }
  0x6e   :  { %v669_v44 = vsel %vm553_vm1, %v486_v32, %v487_v36  ;;  %v489_v45 = vrot.slane %v289_v37, 4  ;;  %v490_v46 = vrot.slane %v290_v38, 2  ;;  %v292_v47 = vperm.slane %v91_v34, 1 }
  0x6f   :  { %891 = vst [vmem:[%s1572_s2 + $0x128] sm:$0xff] %v831_v39  ;;  %v670_v48 = vsel %vm555_vm2, %v668_v41, %v669_v44  ;;  %v671_v50 = vsel %vm551_vm0, %v287_v29, %v488_v42  ;;  %v293_v51 = vperm.slane %v91_v34, 2  ;;  %v294_v52 = vperm.slane %v91_v34, 3  ;;  %v54_v39 = vld [vmem:[%s1571_s0 + $0x158] sm:$0xff] }
  0x70   :  { %v832_v53 = vadd.f32 %v670_v48, %v49_v40  ;;  %v672_v54 = vsel %vm553_vm1, %v489_v45, %v490_v46  ;;  %v491_v55 = vrot.slane %v292_v47, 6  ;;  %v295_v56 = vperm.slane %v91_v34, 4  ;;  %v94_v47 = vld [vmem:[%s1570_s1 + $0xb8] sm:$0xff] }
  0x71   :  { %v673_v58 = vsel %vm555_vm2, %v671_v50, %v672_v54  ;;  %v492_v59 = vrot.slane %v293_v51, 4  ;;  %v493_v60 = vrot.slane %v294_v52, 2  ;;  %v296_v61 = vperm.slane %v91_v34, 5 }
  0x72   :  { %892 = vst [vmem:[%s1572_s2 + $0x130] sm:$0xff] %v832_v53  ;;  %v833_v62 = vadd.f32 %v673_v58, %v50_v49  ;;  %v674_v0 = vsel %vm551_vm0, %v291_v43, %v491_v55  ;;  %v297_v1 = vperm.slane %v91_v34, 6  ;;  %v298_v2 = vperm.slane %v91_v34, 7  ;;  %v55_v49 = vld [vmem:[%s1571_s0 + $0x160] sm:$0xff] }
  0x73   :  { %v675_v3 = vsel %vm553_vm1, %v492_v59, %v493_v60  ;;  %v494_v4 = vrot.slane %v296_v61, 6  ;;  %v299_v5 = vperm.slane %v92_v57, 0  ;;  %v300_v6 = vperm.slane %v92_v57, 1 }
  0x74   :  { %893 = vst [vmem:[%s1572_s2 + $0x138] sm:$0xff] %v833_v62  ;;  %v676_v7 = vsel %vm555_vm2, %v674_v0, %v675_v3  ;;  %v495_v8 = vrot.slane %v297_v1, 4  ;;  %v496_v9 = vrot.slane %v298_v2, 2  ;;  %v301_v10 = vperm.slane %v92_v57, 2  ;;  %v56_v62 = vld [vmem:[%s1571_s0 + $0x168] sm:$0xff] }
  0x75   :  { %v834_v11 = vadd.f32 %v676_v7, %v51_v63  ;;  %v677_v13 = vsel %vm551_vm0, %v295_v56, %v494_v4  ;;  %v302_v14 = vperm.slane %v92_v57, 3  ;;  %v497_v15 = vrot.slane %v300_v6, 6  ;;  %v95_v6 = vld [vmem:[%s1570_s1 + $0xc0] sm:$0xff] }
  0x76   :  { %v678_v16 = vsel %vm553_vm1, %v495_v8, %v496_v9  ;;  %v498_v17 = vrot.slane %v301_v10, 4  ;;  %v303_v18 = vperm.slane %v92_v57, 4  ;;  %v304_v19 = vperm.slane %v92_v57, 5 }
  0x77   :  { %894 = vst [vmem:[%s1572_s2 + $0x140] sm:$0xff] %v834_v11  ;;  %v679_v21 = vsel %vm555_vm2, %v677_v13, %v678_v16  ;;  %v499_v22 = vrot.slane %v302_v14, 2  ;;  %v680_v23 = vsel %vm551_vm0, %v299_v5, %v497_v15  ;;  %v305_v24 = vperm.slane %v92_v57, 6 }
  0x78   :  { %v835_v25 = vadd.f32 %v679_v21, %v52_v12  ;;  %v306_v27 = vperm.slane %v92_v57, 7  ;;  %v500_v28 = vrot.slane %v304_v19, 6  ;;  %v307_v29 = vperm.slane %v93_v20, 0  ;;  %v57_v12 = vld [vmem:[%s1571_s0 + $0x170] sm:$0xff]  ;;  %v58_v21 = vld [vmem:[%s1571_s0 + $0x178] sm:$0xff] }
  0x79   :  { %v681_v30 = vsel %vm553_vm1, %v498_v17, %v499_v22  ;;  %v501_v31 = vrot.slane %v305_v24, 4  ;;  %v308_v32 = vperm.slane %v93_v20, 1  ;;  %v309_v33 = vperm.slane %v93_v20, 2 }
  0x7a   :  { %895 = vst [vmem:[%s1572_s2 + $0x148] sm:$0xff] %v835_v25  ;;  %v682_v34 = vsel %vm555_vm2, %v680_v23, %v681_v30  ;;  %v502_v35 = vrot.slane %v306_v27, 2  ;;  %v683_v36 = vsel %vm551_vm0, %v303_v18, %v500_v28  ;;  %v310_v37 = vperm.slane %v93_v20, 3 }
  0x7b   :  { %v836_v38 = vadd.f32 %v682_v34, %v53_v26  ;;  %v503_v40 = vrot.slane %v308_v32, 6  ;;  %v504_v41 = vrot.slane %v309_v33, 4  ;;  %v311_v42 = vperm.slane %v93_v20, 4 }
  0x7c   :  { %v684_v43 = vsel %vm553_vm1, %v501_v31, %v502_v35  ;;  %v505_v44 = vrot.slane %v310_v37, 2  ;;  %v312_v45 = vperm.slane %v93_v20, 5  ;;  %v313_v46 = vperm.slane %v93_v20, 6  ;;  %v59_v35 = vld [vmem:[%s1571_s0 + $0x180] sm:$0xff] }
  0x7d   :  { %896 = vst [vmem:[%s1572_s2 + $0x150] sm:$0xff] %v836_v38  ;;  %v685_v48 = vsel %vm555_vm2, %v683_v36, %v684_v43  ;;  %v686_v50 = vsel %vm551_vm0, %v307_v29, %v503_v40  ;;  %v314_v51 = vperm.slane %v93_v20, 7  ;;  %v315_v52 = vperm.slane %v94_v47, 0  ;;  %v96_v29 = vld [vmem:[%s1570_s1 + $0xc8] sm:$0xff] }
  0x7e   :  { %v837_v53 = vadd.f32 %v685_v48, %v54_v39  ;;  %v687_v54 = vsel %vm553_vm1, %v504_v41, %v505_v44  ;;  %v506_v55 = vrot.slane %v312_v45, 6  ;;  %v507_v56 = vrot.slane %v313_v46, 4  ;;  %v60_v48 = vld [vmem:[%s1571_s0 + $0x188] sm:$0xff] }
  0x7f   :  { %v688_v57 = vsel %vm555_vm2, %v686_v50, %v687_v54  ;;  %v508_v58 = vrot.slane %v314_v51, 2  ;;  %v316_v59 = vperm.slane %v94_v47, 1  ;;  %v317_v60 = vperm.slane %v94_v47, 2 }
  0x80   :  { %897 = vst [vmem:[%s1572_s2 + $0x158] sm:$0xff] %v837_v53  ;;  %v838_v61 = vadd.f32 %v688_v57, %v55_v49  ;;  %v689_v63 = vsel %vm551_vm0, %v311_v42, %v506_v55  ;;  %v318_v0 = vperm.slane %v94_v47, 3  ;;  %v319_v1 = vperm.slane %v94_v47, 4 }
  0x81   :  { %v690_v2 = vsel %vm553_vm1, %v507_v56, %v508_v58  ;;  %v509_v3 = vrot.slane %v316_v59, 6  ;;  %v510_v4 = vrot.slane %v317_v60, 4  ;;  %v320_v5 = vperm.slane %v94_v47, 5  ;;  %v97_v56 = vld [vmem:[%s1570_s1 + $0xd0] sm:$0xff] }
  0x82   :  { %898 = vst [vmem:[%s1572_s2 + $0x160] sm:$0xff] %v838_v61  ;;  %v691_v7 = vsel %vm555_vm2, %v689_v63, %v690_v2  ;;  %v511_v8 = vrot.slane %v318_v0, 2  ;;  %v321_v9 = vperm.slane %v94_v47, 6  ;;  %v322_v10 = vperm.slane %v94_v47, 7 }
  0x83   :  { %v839_v11 = vadd.f32 %v691_v7, %v56_v62  ;;  %v692_v13 = vsel %vm551_vm0, %v315_v52, %v509_v3  ;;  %v512_v14 = vrot.slane %v320_v5, 6  ;;  %v323_v15 = vperm.slane %v95_v6, 0  ;;  %v61_v62 = vld [vmem:[%s1571_s0 + $0x190] sm:$0xff] }
  0x84   :  { %v693_v16 = vsel %vm553_vm1, %v510_v4, %v511_v8  ;;  %v513_v17 = vrot.slane %v321_v9, 4  ;;  %v514_v18 = vrot.slane %v322_v10, 2  ;;  %v324_v19 = vperm.slane %v95_v6, 1 }
  0x85   :  { %899 = vst [vmem:[%s1572_s2 + $0x168] sm:$0xff] %v839_v11  ;;  %v694_v20 = vsel %vm555_vm2, %v692_v13, %v693_v16  ;;  %v695_v22 = vsel %vm551_vm0, %v319_v1, %v512_v14  ;;  %v325_v23 = vperm.slane %v95_v6, 2  ;;  %v326_v24 = vperm.slane %v95_v6, 3  ;;  %v62_v11 = vld [vmem:[%s1571_s0 + $0x198] sm:$0xff] }
  0x86   :  { %v840_v25 = vadd.f32 %v694_v20, %v57_v12  ;;  %v696_v26 = vsel %vm553_vm1, %v513_v17, %v514_v18  ;;  %v515_v27 = vrot.slane %v324_v19, 6  ;;  %v327_v28 = vperm.slane %v95_v6, 4  ;;  %v98_v19 = vld [vmem:[%s1570_s1 + $0xd8] sm:$0xff] }
  0x87   :  { %v697_v30 = vsel %vm555_vm2, %v695_v22, %v696_v26  ;;  %v516_v31 = vrot.slane %v325_v23, 4  ;;  %v517_v32 = vrot.slane %v326_v24, 2  ;;  %v328_v33 = vperm.slane %v95_v6, 5 }
  0x88   :  { %900 = vst [vmem:[%s1572_s2 + $0x170] sm:$0xff] %v840_v25  ;;  %v841_v34 = vadd.f32 %v697_v30, %v58_v21  ;;  %v698_v36 = vsel %vm551_vm0, %v323_v15, %v515_v27  ;;  %v329_v37 = vperm.slane %v95_v6, 6  ;;  %v330_v38 = vperm.slane %v95_v6, 7  ;;  %v63_v21 = vld [vmem:[%s1571_s0 + $0x1a0] sm:$0xff] }
  0x89   :  { %v699_v39 = vsel %vm553_vm1, %v516_v31, %v517_v32  ;;  %v518_v40 = vrot.slane %v328_v33, 6  ;;  %v331_v41 = vperm.slane %v96_v29, 0  ;;  %v332_v42 = vperm.slane %v96_v29, 1 }
  0x8a   :  { %901 = vst [vmem:[%s1572_s2 + $0x178] sm:$0xff] %v841_v34  ;;  %v700_v43 = vsel %vm555_vm2, %v698_v36, %v699_v39  ;;  %v519_v44 = vrot.slane %v329_v37, 4  ;;  %v520_v45 = vrot.slane %v330_v38, 2  ;;  %v333_v46 = vperm.slane %v96_v29, 2  ;;  %v64_v34 = vld [vmem:[%s1571_s0 + $0x1a8] sm:$0xff] }
  0x8b   :  { %v842_v47 = vadd.f32 %v700_v43, %v59_v35  ;;  %v701_v49 = vsel %vm551_vm0, %v327_v28, %v518_v40  ;;  %v334_v50 = vperm.slane %v96_v29, 3  ;;  %v521_v51 = vrot.slane %v332_v42, 6  ;;  %v99_v42 = vld [vmem:[%s1570_s1 + $0xe0] sm:$0xff] }
  0x8c   :  { %v702_v52 = vsel %vm553_vm1, %v519_v44, %v520_v45  ;;  %v522_v53 = vrot.slane %v333_v46, 4  ;;  %v335_v54 = vperm.slane %v96_v29, 4  ;;  %v336_v55 = vperm.slane %v96_v29, 5 }
  0x8d   :  { %902 = vst [vmem:[%s1572_s2 + $0x180] sm:$0xff] %v842_v47  ;;  %v703_v57 = vsel %vm555_vm2, %v701_v49, %v702_v52  ;;  %v523_v58 = vrot.slane %v334_v50, 2  ;;  %v704_v59 = vsel %vm551_vm0, %v331_v41, %v521_v51  ;;  %v337_v60 = vperm.slane %v96_v29, 6 }
  0x8e   :  { %v843_v61 = vadd.f32 %v703_v57, %v60_v48  ;;  %v338_v63 = vperm.slane %v96_v29, 7  ;;  %v524_v0 = vrot.slane %v336_v55, 6  ;;  %v339_v1 = vperm.slane %v97_v56, 0  ;;  %v65_v48 = vld [vmem:[%s1571_s0 + $0x1b0] sm:$0xff]  ;;  %v66_v57 = vld [vmem:[%s1571_s0 + $0x1b8] sm:$0xff] }
  0x8f   :  { %v705_v2 = vsel %vm553_vm1, %v522_v53, %v523_v58  ;;  %v525_v3 = vrot.slane %v337_v60, 4  ;;  %v340_v4 = vperm.slane %v97_v56, 1  ;;  %v341_v5 = vperm.slane %v97_v56, 2 }
  0x90   :  { %903 = vst [vmem:[%s1572_s2 + $0x188] sm:$0xff] %v843_v61  ;;  %v706_v6 = vsel %vm555_vm2, %v704_v59, %v705_v2  ;;  %v526_v7 = vrot.slane %v338_v63, 2  ;;  %v707_v8 = vsel %vm551_vm0, %v335_v54, %v524_v0  ;;  %v342_v9 = vperm.slane %v97_v56, 3 }
  0x91   :  { %v844_v10 = vadd.f32 %v706_v6, %v61_v62  ;;  %v527_v12 = vrot.slane %v340_v4, 6  ;;  %v528_v13 = vrot.slane %v341_v5, 4  ;;  %v343_v14 = vperm.slane %v97_v56, 4 }
  0x92   :  { %v708_v15 = vsel %vm553_vm1, %v525_v3, %v526_v7  ;;  %v529_v16 = vrot.slane %v342_v9, 2  ;;  %v344_v17 = vperm.slane %v97_v56, 5  ;;  %v345_v18 = vperm.slane %v97_v56, 6  ;;  %v67_v7 = vld [vmem:[%s1571_s0 + $0x1c0] sm:$0xff] }
  0x93   :  { %904 = vst [vmem:[%s1572_s2 + $0x190] sm:$0xff] %v844_v10  ;;  %v709_v20 = vsel %vm555_vm2, %v707_v8, %v708_v15  ;;  %v710_v22 = vsel %vm551_vm0, %v339_v1, %v527_v12  ;;  %v346_v23 = vperm.slane %v97_v56, 7  ;;  %v347_v24 = vperm.slane %v98_v19, 0  ;;  %v100_v1 = vld [vmem:[%s1570_s1 + $0xe8] sm:$0xff] }
  0x94   :  { %v845_v25 = vadd.f32 %v709_v20, %v62_v11  ;;  %v711_v26 = vsel %vm553_vm1, %v528_v13, %v529_v16  ;;  %v530_v27 = vrot.slane %v344_v17, 6  ;;  %v531_v28 = vrot.slane %v345_v18, 4  ;;  %v68_v20 = vld [vmem:[%s1571_s0 + $0x1c8] sm:$0xff] }
  0x95   :  { %v712_v29 = vsel %vm555_vm2, %v710_v22, %v711_v26  ;;  %v532_v30 = vrot.slane %v346_v23, 2  ;;  %v348_v31 = vperm.slane %v98_v19, 1  ;;  %v349_v32 = vperm.slane %v98_v19, 2 }
  0x96   :  { %905 = vst [vmem:[%s1572_s2 + $0x198] sm:$0xff] %v845_v25  ;;  %v846_v33 = vadd.f32 %v712_v29, %v63_v21  ;;  %v713_v35 = vsel %vm551_vm0, %v343_v14, %v530_v27  ;;  %v350_v36 = vperm.slane %v98_v19, 3  ;;  %v351_v37 = vperm.slane %v98_v19, 4 }
  0x97   :  { %v714_v38 = vsel %vm553_vm1, %v531_v28, %v532_v30  ;;  %v533_v39 = vrot.slane %v348_v31, 6  ;;  %v534_v40 = vrot.slane %v349_v32, 4  ;;  %v352_v41 = vperm.slane %v98_v19, 5 }
  0x98   :  { %906 = vst [vmem:[%s1572_s2 + $0x1a0] sm:$0xff] %v846_v33  ;;  %v715_v43 = vsel %vm555_vm2, %v713_v35, %v714_v38  ;;  %v535_v44 = vrot.slane %v350_v36, 2  ;;  %v353_v45 = vperm.slane %v98_v19, 6  ;;  %v354_v46 = vperm.slane %v98_v19, 7  ;;  %v69_v33 = vld [vmem:[%s1571_s0 + $0x1d0] sm:$0xff] }
  0x99   :  { %v847_v47 = vadd.f32 %v715_v43, %v64_v34  ;;  %v716_v49 = vsel %vm551_vm0, %v347_v24, %v533_v39  ;;  %v536_v50 = vrot.slane %v352_v41, 6  ;;  %v355_v51 = vperm.slane %v99_v42, 0 }
  0x9a   :  { %v717_v52 = vsel %vm553_vm1, %v534_v40, %v535_v44  ;;  %v537_v53 = vrot.slane %v353_v45, 4  ;;  %v538_v54 = vrot.slane %v354_v46, 2  ;;  %v356_v55 = vperm.slane %v99_v42, 1 }
  0x9b   :  { %907 = vst [vmem:[%s1572_s2 + $0x1a8] sm:$0xff] %v847_v47  ;;  %v718_v56 = vsel %vm555_vm2, %v716_v49, %v717_v52  ;;  %v719_v58 = vsel %vm551_vm0, %v351_v37, %v536_v50  ;;  %v357_v59 = vperm.slane %v99_v42, 2  ;;  %v358_v60 = vperm.slane %v99_v42, 3 }
  0x9c   :  { %v848_v61 = vadd.f32 %v718_v56, %v65_v48  ;;  %v720_v62 = vsel %vm553_vm1, %v537_v53, %v538_v54  ;;  %v539_v63 = vrot.slane %v356_v55, 6  ;;  %v359_v0 = vperm.slane %v99_v42, 4 }
  0x9d   :  { %v721_v2 = vsel %vm555_vm2, %v719_v58, %v720_v62  ;;  %v540_v3 = vrot.slane %v357_v59, 4  ;;  %v541_v4 = vrot.slane %v358_v60, 2  ;;  %v360_v5 = vperm.slane %v99_v42, 5 }
  0x9e   :  { %908 = vst [vmem:[%s1572_s2 + $0x1b0] sm:$0xff] %v848_v61  ;;  %v849_v6 = vadd.f32 %v721_v2, %v66_v57  ;;  %v722_v8 = vsel %vm551_vm0, %v355_v51, %v539_v63  ;;  %v361_v9 = vperm.slane %v99_v42, 6  ;;  %v362_v10 = vperm.slane %v99_v42, 7  ;;  %v70_v42 = vld [vmem:[%s1571_s0 + $0x1d8] sm:$0xff] }
  0x9f   :  { %v723_v11 = vsel %vm553_vm1, %v540_v3, %v541_v4  ;;  %v542_v12 = vrot.slane %v360_v5, 6  ;;  %v363_v13 = vperm.slane %v100_v1, 0  ;;  %v364_v14 = vperm.slane %v100_v1, 1 }
  0xa0   :  { %909 = vst [vmem:[%s1572_s2 + $0x1b8] sm:$0xff] %v849_v6  ;;  %v724_v15 = vsel %vm555_vm2, %v722_v8, %v723_v11  ;;  %v543_v16 = vrot.slane %v361_v9, 4  ;;  %v544_v17 = vrot.slane %v362_v10, 2  ;;  %v365_v18 = vperm.slane %v100_v1, 2 }
  0xa1   :  { %v850_v19 = vadd.f32 %v724_v15, %v67_v7  ;;  %v725_v21 = vsel %vm551_vm0, %v359_v0, %v542_v12  ;;  %v366_v22 = vperm.slane %v100_v1, 3  ;;  %v545_v23 = vrot.slane %v364_v14, 6 }
  0xa2   :  { %v726_v24 = vsel %vm553_vm1, %v543_v16, %v544_v17  ;;  %v546_v25 = vrot.slane %v365_v18, 4  ;;  %v367_v26 = vperm.slane %v100_v1, 4  ;;  %v368_v27 = vperm.slane %v100_v1, 5 }
  0xa3   :  { %910 = vst [vmem:[%s1572_s2 + $0x1c0] sm:$0xff] %v850_v19  ;;  %v727_v28 = vsel %vm555_vm2, %v725_v21, %v726_v24  ;;  %v547_v29 = vrot.slane %v366_v22, 2  ;;  %v728_v30 = vsel %vm551_vm0, %v363_v13, %v545_v23  ;;  %v369_v31 = vperm.slane %v100_v1, 6 }
  0xa4   :  { %v851_v32 = vadd.f32 %v727_v28, %v68_v20  ;;  %v370_v34 = vperm.slane %v100_v1, 7  ;;  %v548_v35 = vrot.slane %v368_v27, 6 }
  0xa5   :  { %v729_v36 = vsel %vm553_vm1, %v546_v25, %v547_v29  ;;  %v549_v37 = vrot.slane %v369_v31, 4 }
  0xa6   :  { %911 = vst [vmem:[%s1572_s2 + $0x1c8] sm:$0xff] %v851_v32  ;;  %v730_v38 = vsel %vm555_vm2, %v728_v30, %v729_v36  ;;  %v550_v39 = vrot.slane %v370_v34, 2  ;;  %v731_v40 = vsel %vm551_vm0, %v367_v26, %v548_v35 }
  0xa7   :  { %v852_v41 = vadd.f32 %v730_v38, %v69_v33 }
  0xa8   :  { %v732_v43 = vsel %vm553_vm1, %v549_v37, %v550_v39 }
  0xa9   :  { %912 = vst [vmem:[%s1572_s2 + $0x1d0] sm:$0xff] %v852_v41  ;;  %v733_v44 = vsel %vm555_vm2, %v731_v40, %v732_v43 }
  0xaa   :  { %v853_v45 = vadd.f32 %v733_v44, %v70_v42 }
  0xac   :  { %918 = vst.msk [vmem:[%s1572_s2 + $0x1d8] sm:$0xff] %vm917_vm7, %v853_v45 }

</bundles_post_ra>
